<compile_context>
chip_gen: v7x
topology: tpu7x:2x2x1
jax: 0.10.0
libtpu: 0.0.40
codegen_flags: <defaults>
</compile_context>

<pallas_src>
import jax
import jax.numpy as jnp
from jax.experimental import pallas as pl
from jax.experimental.pallas import tpu as pltpu

EPS = 1e-5


def encoder_block_kernel(cols1_ref, w1_ref, g1_ref, be1_ref,
                         mfirst_ref, mlast_ref,
                         w2_ref, g2_ref, be2_ref, o_ref):
    nl = cols1_ref.shape[1]          # N * L (static)
    inv_nl = 1.0 / float(nl)

    def bn_relu(h, gamma, beta):
        # Training-mode BN, one-pass stats (sum / sum-of-squares), fused affine.
        s1 = jnp.sum(h, axis=1, keepdims=True)
        s2 = jnp.sum(h * h, axis=1, keepdims=True)
        mean = s1 * inv_nl
        var = s2 * inv_nl - mean * mean        # biased variance
        scale = gamma * jax.lax.rsqrt(var + EPS)
        shift = beta - mean * scale
        return jnp.maximum(h * scale + shift, 0.0)

    # ---- Conv1 (bias folded away by BN) : single MXU matmul over 3*C_in ----
    h1 = jnp.dot(w1_ref[...], cols1_ref[...], preferred_element_type=jnp.float32)
    a1 = bn_relu(h1, g1_ref[...], be1_ref[...])            # (C_out, N*L)

    # ---- Conv2: build im2col in-kernel from contiguous lane slices ----
    c_out = a1.shape[0]
    z = jnp.zeros((c_out, 1), jnp.float32)
    a1p = jnp.concatenate([z, a1, z], axis=1)               # (C_out, N*L + 2)
    v0 = a1p[:, 0:nl] * mfirst_ref[...]                     # left tap, 0 at j == 0
    v2 = a1p[:, 2:nl + 2] * mlast_ref[...]                  # right tap, 0 at j == L-1
    cols2 = jnp.concatenate([v0, a1, v2], axis=0)           # (3*C_out, N*L)
    h2 = jnp.dot(w2_ref[...], cols2, preferred_element_type=jnp.float32)
    a2 = bn_relu(h2, g2_ref[...], be2_ref[...])             # (C_out, N*L)

    # ---- MaxPool(2,2): neighbor max; even-column decimation done in the wrapper ----
    o_ref[...] = jnp.maximum(a2[:, :nl - 1], a2[:, 1:])     # (C_out, N*L - 1)


def encoder_block(x, params):
    """EncoderBlock forward: one Pallas invocation on lane-dense (C, N*L) slabs."""
    n, cin, L = x.shape
    cout = params["w1"].shape[0]
    assert L % 2 == 0, "MaxPool1d(2,2) path assumes even L (PyTorch would floor)."
    nl = n * L
    f32 = jnp.float32
    x = x.astype(f32)

    # --- wrapper-side layout plumbing (plain XLA, outside the kernel) ---
    # im2col slab for conv1: rows = [tap0 | tap1 | tap2] x C_in, cols = (sample, pos).
    xt = jnp.transpose(x, (1, 0, 2))                        # (C_in, N, L)
    xp = jnp.pad(xt, ((0, 0), (0, 0), (1, 1)))              # (C_in, N, L+2)
    cols1 = jnp.concatenate([xp[:, :, k:k + L] for k in range(3)], axis=0)
    cols1 = cols1.reshape(3 * cin, nl)                      # (3*C_in, N*L)

    # Conv weights folded to (C_out, 3*C): row layout matches the im2col stacking.
    def wmat(w):
        return jnp.transpose(w, (0, 2, 1)).reshape(w.shape[0], -1).astype(f32)

    def col(v):
        return v.reshape(-1, 1).astype(f32)

    # Boundary masks for the in-kernel conv2 im2col (zero cross-sample taps).
    j = jnp.arange(nl) % L
    mask_first = (j != 0).astype(f32)[None, :]              # (1, N*L)
    mask_last = (j != L - 1).astype(f32)[None, :]           # (1, N*L)

    # NOTE: conv biases b1/b2 are intentionally NOT passed — training-mode BN's mean
    # subtraction cancels them exactly.
    args = (cols1, wmat(params["w1"]), col(params["g1"]), col(params["be1"]),
            mask_first, mask_last,
            wmat(params["w2"]), col(params["g2"]), col(params["be2"]))

    def full_spec(a):
        return pl.BlockSpec(a.shape, lambda i, _nd=a.ndim: (0,) * _nd)

    out_shape = jax.ShapeDtypeStruct((cout, nl - 1), f32)
    cand = pl.pallas_call(
        encoder_block_kernel,
        out_shape=out_shape,
        grid=(1,),
        in_specs=[full_spec(a) for a in args],
        out_specs=pl.BlockSpec(out_shape.shape, lambda i: (0, 0)),
        compiler_params=pltpu.CompilerParams(
            dimension_semantics=("arbitrary",),
            vmem_limit_bytes=64 * 1024 * 1024),
    )(*args)

    # Stride-2 decimation + un-slab back to PyTorch's (N, C_out, L//2) layout.
    pooled = cand[:, 0::2].reshape(cout, n, L // 2)
    return jnp.transpose(pooled, (1, 0, 2))


def init_params(key, cin, cout):
    # Deterministic synthetic parameters (shapes match the PyTorch module).
    ks = jax.random.split(key, 8)
    return {
        "w1": 0.2 * jax.random.normal(ks[0], (cout, cin, 3), jnp.float32),
        "b1": 0.1 * jax.random.normal(ks[1], (cout,), jnp.float32),
        "g1": 1.0 + 0.1 * jax.random.normal(ks[2], (cout,), jnp.float32),
        "be1": 0.1 * jax.random.normal(ks[3], (cout,), jnp.float32),
        "w2": 0.2 * jax.random.normal(ks[4], (cout, cout, 3), jnp.float32),
        "b2": 0.1 * jax.random.normal(ks[5], (cout,), jnp.float32),
        "g2": 1.0 + 0.1 * jax.random.normal(ks[6], (cout,), jnp.float32),
        "be2": 0.1 * jax.random.normal(ks[7], (cout,), jnp.float32),
    }


def reference(x, p):
    """Independent pure-JAX reference (conv WITH bias, two-pass BN stats)."""
    def conv(h, w, b):
        y = jax.lax.conv_general_dilated(
            h, w, window_strides=(1,), padding=((1, 1),),
            dimension_numbers=("NCH", "OIH", "NCH"))
        return y + b[None, :, None]

    def bn_relu(h, g, be):
        mean = h.mean(axis=(0, 2), keepdims=True)
        var = ((h - mean) ** 2).mean(axis=(0, 2), keepdims=True)
        hn = (h - mean) / jnp.sqrt(var + EPS)
        return jnp.maximum(hn * g[None, :, None] + be[None, :, None], 0.0)

    h = bn_relu(conv(x, p["w1"], p["b1"]), p["g1"], p["be1"])
    h = bn_relu(conv(h, p["w2"], p["b2"]), p["g2"], p["be2"])
    n, c, L = h.shape
    return jnp.max(h.reshape(n, c, L // 2, 2), axis=-1)


if __name__ == "__main__":
    N, C_IN, C_OUT, L = 2, 4, 8, 16
    key = jax.random.PRNGKey(0)
    kx, kp = jax.random.split(key)
    x = jax.random.normal(kx, (N, C_IN, L), jnp.float32)
    params = init_params(kp, C_IN, C_OUT)

    out = jax.block_until_ready(encoder_block(x, params))
    assert out.shape == (N, C_OUT, L // 2), out.shape

    ref = reference(x, params)
    err = float(jnp.max(jnp.abs(out - ref)))
    assert jnp.allclose(out, ref, rtol=1e-4, atol=1e-4), err

    print("KERNEL_OK")
</pallas_src>

<mosaic_0001>
module attributes {stable_mosaic.version = 11 : i64} {
  func.func @encoder_block_kernel(%arg0: i32, %arg1: memref<12x32xf32, #tpu.memory_space<vmem>>, %arg2: memref<8x12xf32, #tpu.memory_space<vmem>>, %arg3: memref<8x1xf32, #tpu.memory_space<vmem>>, %arg4: memref<8x1xf32, #tpu.memory_space<vmem>>, %arg5: memref<1x32xf32, #tpu.memory_space<vmem>>, %arg6: memref<1x32xf32, #tpu.memory_space<vmem>>, %arg7: memref<8x24xf32, #tpu.memory_space<vmem>>, %arg8: memref<8x1xf32, #tpu.memory_space<vmem>>, %arg9: memref<8x1xf32, #tpu.memory_space<vmem>>, %arg10: memref<8x31xf32, #tpu.memory_space<vmem>>) attributes {dimension_semantics = [#tpu.dimension_semantics<arbitrary>], iteration_bounds = array<i64: 1>, scalar_prefetch = 0 : i64, scratch_operands = 0 : i64, tpu.core_type = #tpu.core_type<tc>, window_params = [{pipeline_mode = #tpu.pipeline_mode<synchronous>, transform_indices = @transform_0, window_bounds = array<i64: 12, 32>}, {pipeline_mode = #tpu.pipeline_mode<synchronous>, transform_indices = @transform_1, window_bounds = array<i64: 8, 12>}, {pipeline_mode = #tpu.pipeline_mode<synchronous>, transform_indices = @transform_2, window_bounds = array<i64: 8, 1>}, {pipeline_mode = #tpu.pipeline_mode<synchronous>, transform_indices = @transform_3, window_bounds = array<i64: 8, 1>}, {pipeline_mode = #tpu.pipeline_mode<synchronous>, transform_indices = @transform_4, window_bounds = array<i64: 1, 32>}, {pipeline_mode = #tpu.pipeline_mode<synchronous>, transform_indices = @transform_5, window_bounds = array<i64: 1, 32>}, {pipeline_mode = #tpu.pipeline_mode<synchronous>, transform_indices = @transform_6, window_bounds = array<i64: 8, 24>}, {pipeline_mode = #tpu.pipeline_mode<synchronous>, transform_indices = @transform_7, window_bounds = array<i64: 8, 1>}, {pipeline_mode = #tpu.pipeline_mode<synchronous>, transform_indices = @transform_8, window_bounds = array<i64: 8, 1>}, {pipeline_mode = #tpu.pipeline_mode<synchronous>, transform_indices = @transform_9, window_bounds = array<i64: 8, 31>}]} {
    %c0 = arith.constant 0 : index
    %c0_0 = arith.constant 0 : index
    %0 = vector.load %arg2[%c0, %c0_0] : memref<8x12xf32, #tpu.memory_space<vmem>>, vector<8x12xf32>
    %c0_1 = arith.constant 0 : index
    %c0_2 = arith.constant 0 : index
    %1 = vector.load %arg1[%c0_1, %c0_2] : memref<12x32xf32, #tpu.memory_space<vmem>>, vector<12x32xf32>
    %cst = arith.constant dense<0.000000e+00> : vector<8x32xf32>
    %2 = tpu.matmul %0, %1, %cst {dimension_numbers = #tpu.dot_dimension_numbers<[1], [0], [0], [1], [0, 0, 1, 1], [], []>} : vector<8x12xf32>, vector<12x32xf32>, vector<8x32xf32> -> vector<8x32xf32>
    %c0_3 = arith.constant 0 : index
    %c0_4 = arith.constant 0 : index
    %3 = vector.load %arg3[%c0_3, %c0_4] : memref<8x1xf32, #tpu.memory_space<vmem>>, vector<8x1xf32>
    %c0_5 = arith.constant 0 : index
    %c0_6 = arith.constant 0 : index
    %4 = vector.load %arg4[%c0_5, %c0_6] : memref<8x1xf32, #tpu.memory_space<vmem>>, vector<8x1xf32>
    %cst_7 = arith.constant dense<0.000000e+00> : vector<8xf32>
    %5 = vector.multi_reduction <add>, %2, %cst_7 [1] : vector<8x32xf32> to vector<8xf32>
    %6 = vector.shape_cast %5 : vector<8xf32> to vector<8x1xf32>
    %7 = arith.mulf %2, %2 : vector<8x32xf32>
    %cst_8 = arith.constant dense<0.000000e+00> : vector<8xf32>
    %8 = vector.multi_reduction <add>, %7, %cst_8 [1] : vector<8x32xf32> to vector<8xf32>
    %9 = vector.shape_cast %8 : vector<8xf32> to vector<8x1xf32>
    %cst_9 = arith.constant 3.125000e-02 : f32
    %10 = vector.broadcast %cst_9 : f32 to vector<8x1xf32>
    %11 = arith.mulf %6, %10 : vector<8x1xf32>
    %cst_10 = arith.constant 3.125000e-02 : f32
    %12 = vector.broadcast %cst_10 : f32 to vector<8x1xf32>
    %13 = arith.mulf %9, %12 : vector<8x1xf32>
    %14 = arith.mulf %11, %11 : vector<8x1xf32>
    %15 = arith.subf %13, %14 : vector<8x1xf32>
    %cst_11 = arith.constant 9.99999974E-6 : f32
    %16 = vector.broadcast %cst_11 : f32 to vector<8x1xf32>
    %17 = arith.addf %15, %16 : vector<8x1xf32>
    %18 = math.rsqrt %17 : vector<8x1xf32>
    %19 = arith.mulf %3, %18 : vector<8x1xf32>
    %20 = arith.mulf %11, %19 : vector<8x1xf32>
    %21 = arith.subf %4, %20 : vector<8x1xf32>
    %22 = vector.broadcast %19 : vector<8x1xf32> to vector<8x32xf32>
    %23 = arith.mulf %2, %22 : vector<8x32xf32>
    %24 = vector.broadcast %21 : vector<8x1xf32> to vector<8x32xf32>
    %25 = arith.addf %23, %24 : vector<8x32xf32>
    %cst_12 = arith.constant 0.000000e+00 : f32
    %26 = vector.broadcast %cst_12 : f32 to vector<8x32xf32>
    %27 = arith.maximumf %25, %26 : vector<8x32xf32>
    %cst_13 = arith.constant 0.000000e+00 : f32
    %28 = vector.broadcast %cst_13 : f32 to vector<8x1xf32>
    %29 = tpu.concatenate %28, %27, %28 in 1 : vector<8x1xf32>, vector<8x32xf32>, vector<8x1xf32> -> vector<8x34xf32>
    %30 = vector.extract_strided_slice %29 {offsets = [0, 0], sizes = [8, 32], strides = [1, 1]} : vector<8x34xf32> to vector<8x32xf32>
    %c0_14 = arith.constant 0 : index
    %c0_15 = arith.constant 0 : index
    %31 = vector.load %arg5[%c0_14, %c0_15] : memref<1x32xf32, #tpu.memory_space<vmem>>, vector<1x32xf32>
    %32 = vector.broadcast %31 : vector<1x32xf32> to vector<8x32xf32>
    %33 = arith.mulf %30, %32 : vector<8x32xf32>
    %34 = vector.extract_strided_slice %29 {offsets = [0, 2], sizes = [8, 32], strides = [1, 1]} : vector<8x34xf32> to vector<8x32xf32>
    %c0_16 = arith.constant 0 : index
    %c0_17 = arith.constant 0 : index
    %35 = vector.load %arg6[%c0_16, %c0_17] : memref<1x32xf32, #tpu.memory_space<vmem>>, vector<1x32xf32>
    %36 = vector.broadcast %35 : vector<1x32xf32> to vector<8x32xf32>
    %37 = arith.mulf %34, %36 : vector<8x32xf32>
    %38 = tpu.concatenate %33, %27, %37 in 0 : vector<8x32xf32>, vector<8x32xf32>, vector<8x32xf32> -> vector<24x32xf32>
    %c0_18 = arith.constant 0 : index
    %c0_19 = arith.constant 0 : index
    %39 = vector.load %arg7[%c0_18, %c0_19] : memref<8x24xf32, #tpu.memory_space<vmem>>, vector<8x24xf32>
    %cst_20 = arith.constant dense<0.000000e+00> : vector<8x32xf32>
    %40 = tpu.matmul %39, %38, %cst_20 {dimension_numbers = #tpu.dot_dimension_numbers<[1], [0], [0], [1], [0, 0, 1, 1], [], []>} : vector<8x24xf32>, vector<24x32xf32>, vector<8x32xf32> -> vector<8x32xf32>
    %c0_21 = arith.constant 0 : index
    %c0_22 = arith.constant 0 : index
    %41 = vector.load %arg8[%c0_21, %c0_22] : memref<8x1xf32, #tpu.memory_space<vmem>>, vector<8x1xf32>
    %c0_23 = arith.constant 0 : index
    %c0_24 = arith.constant 0 : index
    %42 = vector.load %arg9[%c0_23, %c0_24] : memref<8x1xf32, #tpu.memory_space<vmem>>, vector<8x1xf32>
    %cst_25 = arith.constant dense<0.000000e+00> : vector<8xf32>
    %43 = vector.multi_reduction <add>, %40, %cst_25 [1] : vector<8x32xf32> to vector<8xf32>
    %44 = vector.shape_cast %43 : vector<8xf32> to vector<8x1xf32>
    %45 = arith.mulf %40, %40 : vector<8x32xf32>
    %cst_26 = arith.constant dense<0.000000e+00> : vector<8xf32>
    %46 = vector.multi_reduction <add>, %45, %cst_26 [1] : vector<8x32xf32> to vector<8xf32>
    %47 = vector.shape_cast %46 : vector<8xf32> to vector<8x1xf32>
    %cst_27 = arith.constant 3.125000e-02 : f32
    %48 = vector.broadcast %cst_27 : f32 to vector<8x1xf32>
    %49 = arith.mulf %44, %48 : vector<8x1xf32>
    %cst_28 = arith.constant 3.125000e-02 : f32
    %50 = vector.broadcast %cst_28 : f32 to vector<8x1xf32>
    %51 = arith.mulf %47, %50 : vector<8x1xf32>
    %52 = arith.mulf %49, %49 : vector<8x1xf32>
    %53 = arith.subf %51, %52 : vector<8x1xf32>
    %cst_29 = arith.constant 9.99999974E-6 : f32
    %54 = vector.broadcast %cst_29 : f32 to vector<8x1xf32>
    %55 = arith.addf %53, %54 : vector<8x1xf32>
    %56 = math.rsqrt %55 : vector<8x1xf32>
    %57 = arith.mulf %41, %56 : vector<8x1xf32>
    %58 = arith.mulf %49, %57 : vector<8x1xf32>
    %59 = arith.subf %42, %58 : vector<8x1xf32>
    %60 = vector.broadcast %57 : vector<8x1xf32> to vector<8x32xf32>
    %61 = arith.mulf %40, %60 : vector<8x32xf32>
    %62 = vector.broadcast %59 : vector<8x1xf32> to vector<8x32xf32>
    %63 = arith.addf %61, %62 : vector<8x32xf32>
    %cst_30 = arith.constant 0.000000e+00 : f32
    %64 = vector.broadcast %cst_30 : f32 to vector<8x32xf32>
    %65 = arith.maximumf %63, %64 : vector<8x32xf32>
    %66 = vector.extract_strided_slice %65 {offsets = [0, 0], sizes = [8, 31], strides = [1, 1]} : vector<8x32xf32> to vector<8x31xf32>
    %67 = vector.extract_strided_slice %65 {offsets = [0, 1], sizes = [8, 31], strides = [1, 1]} : vector<8x32xf32> to vector<8x31xf32>
    %68 = arith.maximumf %66, %67 : vector<8x31xf32>
    %c0_31 = arith.constant 0 : index
    %c0_32 = arith.constant 0 : index
    %69 = vector.load %arg10[%c0_31, %c0_32] : memref<8x31xf32, #tpu.memory_space<vmem>>, vector<8x31xf32>
    tpu.vector_store %arg10[%c0_31, %c0_32], %68 {strides = array<i32>} : memref<8x31xf32, #tpu.memory_space<vmem>>, vector<8x31xf32>,
    return
  }
  func.func @transform_0(%arg0: i32) -> (i32, i32) {
    %c0_i32 = arith.constant 0 : i32
    %c0_i32_0 = arith.constant 0 : i32
    %c0_i32_1 = arith.constant 0 : i32
    return %c0_i32, %c0_i32_0 : i32, i32
  }
  func.func @transform_1(%arg0: i32) -> (i32, i32) {
    %c0_i32 = arith.constant 0 : i32
    %c0_i32_0 = arith.constant 0 : i32
    %c0_i32_1 = arith.constant 0 : i32
    return %c0_i32, %c0_i32_0 : i32, i32
  }
  func.func @transform_2(%arg0: i32) -> (i32, i32) {
    %c0_i32 = arith.constant 0 : i32
    %c0_i32_0 = arith.constant 0 : i32
    %c0_i32_1 = arith.constant 0 : i32
    return %c0_i32, %c0_i32_0 : i32, i32
  }
  func.func @transform_3(%arg0: i32) -> (i32, i32) {
    %c0_i32 = arith.constant 0 : i32
    %c0_i32_0 = arith.constant 0 : i32
    %c0_i32_1 = arith.constant 0 : i32
    return %c0_i32, %c0_i32_0 : i32, i32
  }
  func.func @transform_4(%arg0: i32) -> (i32, i32) {
    %c0_i32 = arith.constant 0 : i32
    %c0_i32_0 = arith.constant 0 : i32
    %c0_i32_1 = arith.constant 0 : i32
    return %c0_i32, %c0_i32_0 : i32, i32
  }
  func.func @transform_5(%arg0: i32) -> (i32, i32) {
    %c0_i32 = arith.constant 0 : i32
    %c0_i32_0 = arith.constant 0 : i32
    %c0_i32_1 = arith.constant 0 : i32
    return %c0_i32, %c0_i32_0 : i32, i32
  }
  func.func @transform_6(%arg0: i32) -> (i32, i32) {
    %c0_i32 = arith.constant 0 : i32
    %c0_i32_0 = arith.constant 0 : i32
    %c0_i32_1 = arith.constant 0 : i32
    return %c0_i32, %c0_i32_0 : i32, i32
  }
  func.func @transform_7(%arg0: i32) -> (i32, i32) {
    %c0_i32 = arith.constant 0 : i32
    %c0_i32_0 = arith.constant 0 : i32
    %c0_i32_1 = arith.constant 0 : i32
    return %c0_i32, %c0_i32_0 : i32, i32
  }
  func.func @transform_8(%arg0: i32) -> (i32, i32) {
    %c0_i32 = arith.constant 0 : i32
    %c0_i32_0 = arith.constant 0 : i32
    %c0_i32_1 = arith.constant 0 : i32
    return %c0_i32, %c0_i32_0 : i32, i32
  }
  func.func @transform_9(%arg0: i32) -> (i32, i32) {
    %c0_i32 = arith.constant 0 : i32
    %c0_i32_0 = arith.constant 0 : i32
    %c0_i32_1 = arith.constant 0 : i32
    return %c0_i32, %c0_i32_0 : i32, i32
  }
}

</mosaic_0001>

<bundles_post_ra>
// kernel: tpu_custom_call.1
= control target key start
LH: loop header
LB: loop body
LE: loop exit
PB: predicated region body
PF: predicated region fallthrough
CT: control target
= control target key end

     0   :  { %14 = vsyncpa [#allocation3], 0  ;;  %s903_s0 = inlined_call_operand.hbm [shape: f32[12,32], index: 0, kind: input, shape index: {}]   ;;  %s904_s1 = inlined_call_operand.hbm [shape: f32[8,12], index: 1, kind: input, shape index: {}]   ;;  %s905_s2 = inlined_call_operand.hbm [shape: f32[8,1], index: 2, kind: input, shape index: {}]   ;;  %s906_s3 = inlined_call_operand.hbm [shape: f32[8,1], index: 3, kind: input, shape index: {}]   ;;  %s907_s4 = inlined_call_operand.hbm [shape: f32[1,32], index: 4, kind: input, shape index: {}]   ;;  %s908_s5 = inlined_call_operand.hbm [shape: f32[1,32], index: 5, kind: input, shape index: {}]   ;;  %s909_s6 = inlined_call_operand.hbm [shape: f32[8,24], index: 6, kind: input, shape index: {}]   ;;  %s910_s7 = inlined_call_operand.hbm [shape: f32[8,1], index: 7, kind: input, shape index: {}]   ;;  %s911_s8 = inlined_call_operand.hbm [shape: f32[8,1], index: 8, kind: input, shape index: {}]   ;;  %s912_s9 = inlined_call_operand.hbm [shape: f32[8,31], index: 9, kind: output, shape index: {}]  }
   0x1   :  { %15 = vsyncpa [#allocation6], 0 }
   0x2   :  { %16 = vsyncpa [#allocation9], 0 }
   0x3   :  { %17 = vsyncpa [#allocation12], 0 }
   0x4   :  { %18 = vsyncpa [#allocation15], 0 }
   0x5   :  { %19 = vsyncpa [#allocation4], 0  ;;  %s708_s30 = smov [#allocation5]   ;;  %s709_s11 = smov [#allocation8]  }
   0x6   :  { %s38_s10 = sshll.u32 %s708_s30, 4  ;;  %s58_s12 = sshll.u32 %s709_s11, 4  ;;  %s39_s10 = int_to_ptr.vmem [resolvable:$true] %s38_s10  ;;  %s59_s12 = int_to_ptr.vmem [resolvable:$true] %s58_s12 }
   0x7   :  { %s476_s15 = scalar_lea.hbm %s904_s1, 128 }
   0x8   :  { %p477_p0 = scmp.ne.s32.totalorder %s904_s1, %s476_s15  ;;  %p480_p1 = scmp.lt.u32.totalorder %s476_s15, %s904_s1 }
   0xa   :  { %p482_p2 = pnand %p480_p1, %p477_p0 }
   0xc   :  { %485 = shalt.err (!%p482_p2)
}
   0xd   :  { %s486_s20 = scalar_lea.vmem %s39_s10, 128  ;;  %p491_p4 = scmp.lt.s32.totalorder %s39_s10, %s39_s10 }
   0xe   :  { %p487_p3 = scmp.ne.s32.totalorder %s39_s10, %s486_s20  ;;  %p492_p5 = scmp.lt.s32.totalorder %s486_s20, %s486_s20 }
  0x10   :  { %p493_p6 = por %p492_p5, %p491_p4 }
  0x12   :  { %p494_p7 = pnand %p493_p6, %p487_p3 }
  0x14   :  { %497 = shalt.err (!%p494_p7)
}
  0x15   :  { %41 = dma.hbm_to_vmem [thread:$0]  %s904_s1, 128, %s39_s10, [#allocation6]  }
  0x16   :  { %s498_s25 = scalar_lea.hbm %s906_s3, 128 }
  0x17   :  { %p499_p8 = scmp.ne.s32.totalorder %s906_s3, %s498_s25  ;;  %p502_p9 = scmp.lt.u32.totalorder %s498_s25, %s906_s3 }
  0x19   :  { %p504_p10 = pnand %p502_p9, %p499_p8 }
  0x1b   :  { %507 = shalt.err (!%p504_p10)
}
  0x1c   :  { %s508_s30 = scalar_lea.vmem %s59_s12, 128  ;;  %p513_p12 = scmp.lt.s32.totalorder %s59_s12, %s59_s12 }
  0x1d   :  { %p509_p11 = scmp.ne.s32.totalorder %s59_s12, %s508_s30  ;;  %p514_p13 = scmp.lt.s32.totalorder %s508_s30, %s508_s30 }
  0x1f   :  { %p515_p0 = por %p514_p13, %p513_p12 }
  0x21   :  { %p516_p1 = pnand %p515_p0, %p509_p11 }
  0x23   :  { %519 = shalt.err (!%p516_p1)
}
  0x24   :  { %61 = dma.hbm_to_vmem [thread:$0]  %s906_s3, 128, %s59_s12, [#allocation9]  }
  0x25   :  { %s710_s11 = smov [#allocation11]   ;;  %s711_s14 = smov [#allocation14]  }
  0x26   :  { %s78_s13 = sshll.u32 %s710_s11, 4  ;;  %s98_s15 = sshll.u32 %s711_s14, 4  ;;  %s79_s13 = int_to_ptr.vmem [resolvable:$true] %s78_s13  ;;  %s99_s15 = int_to_ptr.vmem [resolvable:$true] %s98_s15 }
  0x27   :  { %s520_s18 = scalar_lea.hbm %s908_s5, 16 }
  0x28   :  { %p521_p2 = scmp.ne.s32.totalorder %s908_s5, %s520_s18  ;;  %p524_p3 = scmp.lt.u32.totalorder %s520_s18, %s908_s5 }
  0x2a   :  { %p526_p4 = pnand %p524_p3, %p521_p2 }
  0x2c   :  { %529 = shalt.err (!%p526_p4)
}
  0x2d   :  { %s530_s3 = scalar_lea.vmem %s79_s13, 16  ;;  %s534_s12 = scalar_lea.vmem %s79_s13, 32 }
  0x2e   :  { %p531_p5 = scmp.ne.s32.totalorder %s79_s13, %s530_s3  ;;  %p535_p6 = scmp.lt.s32.totalorder %s79_s13, %s79_s13 }
  0x2f   :  { %p536_p7 = scmp.lt.s32.totalorder %s534_s12, %s530_s3 }
  0x31   :  { %p537_p8 = por %p536_p7, %p535_p6 }
  0x33   :  { %p538_p9 = pnand %p537_p8, %p531_p5 }
  0x35   :  { %541 = shalt.err (!%p538_p9)
}
  0x36   :  { %81 = dma.hbm_to_vmem [thread:$0]  %s908_s5, 16, %s79_s13, [#allocation12]  }
  0x37   :  { %s542_s27 = scalar_lea.hbm %s910_s7, 128 }
  0x38   :  { %p543_p10 = scmp.ne.s32.totalorder %s910_s7, %s542_s27  ;;  %p546_p11 = scmp.lt.u32.totalorder %s542_s27, %s910_s7 }
  0x3a   :  { %p548_p12 = pnand %p546_p11, %p543_p10 }
  0x3c   :  { %551 = shalt.err (!%p548_p12)
}
  0x3d   :  { %s552_s10 = scalar_lea.vmem %s99_s15, 128  ;;  %p557_p0 = scmp.lt.s32.totalorder %s99_s15, %s99_s15 }
  0x3e   :  { %p553_p13 = scmp.ne.s32.totalorder %s99_s15, %s552_s10  ;;  %p558_p1 = scmp.lt.s32.totalorder %s552_s10, %s552_s10 }
  0x40   :  { %p559_p2 = por %p558_p1, %p557_p0 }
  0x42   :  { %p560_p3 = pnand %p559_p2, %p553_p13 }
  0x44   :  { %563 = shalt.err (!%p560_p3)
}
  0x45   :  { %101 = dma.hbm_to_vmem [thread:$0]  %s910_s7, 128, %s99_s15, [#allocation15]  }
  0x46   :  { %s712_s13 = smov [#allocation2]   ;;  %s564_s18 = scalar_lea.hbm %s903_s0, 256 }
  0x47   :  { %s25_s14 = sshll.u32 %s712_s13, 4  ;;  %p565_p4 = scmp.ne.s32.totalorder %s903_s0, %s564_s18  ;;  %s26_s14 = int_to_ptr.vmem [resolvable:$true] %s25_s14 }
  0x48   :  { %p568_p5 = scmp.lt.u32.totalorder %s564_s18, %s903_s0 }
  0x4a   :  { %p570_p6 = pnand %p568_p5, %p565_p4 }
  0x4c   :  { %573 = shalt.err (!%p570_p6)
}
  0x4d   :  { %s574_s3 = scalar_lea.vmem %s26_s14, 256  ;;  %p579_p8 = scmp.lt.s32.totalorder %s26_s14, %s26_s14 }
  0x4e   :  { %p575_p7 = scmp.ne.s32.totalorder %s26_s14, %s574_s3  ;;  %p580_p9 = scmp.lt.s32.totalorder %s574_s3, %s574_s3 }
  0x50   :  { %p581_p10 = por %p580_p9, %p579_p8 }
  0x52   :  { %p582_p11 = pnand %p581_p10, %p575_p7 }
  0x54   :  { %585 = shalt.err (!%p582_p11)
}
  0x55   :  { %s713_s7 = smov 128   ;;  %s714_s15 = smov 8  }
  0x56   :  { %31 = dma.hbm_to_vmem [thread:$0]  %s903_s0, 256, %s26_s14, [#allocation3], %s713_s7, %s713_s7, %s714_s15  }
  0x57   :  { %s715_s24 = smov [#allocation7]   ;;  %s716_s26 = smov [#allocation10]  }
  0x58   :  { %s48_s25 = sshll.u32 %s715_s24, 4  ;;  %s68_s27 = sshll.u32 %s716_s26, 4  ;;  %s49_s25 = int_to_ptr.vmem [resolvable:$true] %s48_s25  ;;  %s69_s27 = int_to_ptr.vmem [resolvable:$true] %s68_s27 }
  0x59   :  { %s586_s30 = scalar_lea.hbm %s905_s2, 128 }
  0x5a   :  { %p587_p12 = scmp.ne.s32.totalorder %s905_s2, %s586_s30  ;;  %p590_p13 = scmp.lt.u32.totalorder %s586_s30, %s905_s2 }
  0x5c   :  { %p592_p0 = pnand %p590_p13, %p587_p12 }
  0x5e   :  { %595 = shalt.err (!%p592_p0)
}
  0x5f   :  { %s596_s0 = scalar_lea.vmem %s49_s25, 128  ;;  %p601_p2 = scmp.lt.s32.totalorder %s49_s25, %s49_s25 }
  0x60   :  { %p597_p1 = scmp.ne.s32.totalorder %s49_s25, %s596_s0  ;;  %p602_p3 = scmp.lt.s32.totalorder %s596_s0, %s596_s0 }
  0x62   :  { %p603_p4 = por %p602_p3, %p601_p2 }
  0x64   :  { %p604_p5 = pnand %p603_p4, %p597_p1 }
  0x66   :  { %607 = shalt.err (!%p604_p5)
}
  0x67   :  { %51 = dma.hbm_to_vmem [thread:$0]  %s905_s2, 128, %s49_s25, [#allocation6]  }
  0x68   :  { %s608_s18 = scalar_lea.hbm %s907_s4, 16 }
  0x69   :  { %p609_p6 = scmp.ne.s32.totalorder %s907_s4, %s608_s18  ;;  %p612_p7 = scmp.lt.u32.totalorder %s608_s18, %s907_s4 }
  0x6b   :  { %p614_p8 = pnand %p612_p7, %p609_p6 }
  0x6d   :  { %617 = shalt.err (!%p614_p8)
}
  0x6e   :  { %s618_s3 = scalar_lea.vmem %s69_s27, 16  ;;  %s622_s7 = scalar_lea.vmem %s69_s27, 32 }
  0x6f   :  { %p619_p9 = scmp.ne.s32.totalorder %s69_s27, %s618_s3  ;;  %p623_p10 = scmp.lt.s32.totalorder %s69_s27, %s69_s27 }
  0x70   :  { %p624_p11 = scmp.lt.s32.totalorder %s622_s7, %s618_s3 }
  0x72   :  { %p625_p12 = por %p624_p11, %p623_p10 }
  0x74   :  { %p626_p13 = pnand %p625_p12, %p619_p9 }
  0x76   :  { %629 = shalt.err (!%p626_p13)
}
  0x77   :  { %71 = dma.hbm_to_vmem [thread:$0]  %s907_s4, 16, %s69_s27, [#allocation9]  }
  0x78   :  { %s717_s12 = smov [#allocation13]   ;;  %s718_s24 = smov [#allocation16]  }
  0x79   :  { %s88_s23 = sshll.u32 %s717_s12, 4  ;;  %s108_s25 = sshll.u32 %s718_s24, 4  ;;  %s89_s23 = int_to_ptr.vmem [resolvable:$true] %s88_s23  ;;  %s109_s25 = int_to_ptr.vmem [resolvable:$true] %s108_s25 }
  0x7a   :  { %s630_s29 = scalar_lea.hbm %s909_s6, 128 }
  0x7b   :  { %p631_p0 = scmp.ne.s32.totalorder %s909_s6, %s630_s29  ;;  %p634_p1 = scmp.lt.u32.totalorder %s630_s29, %s909_s6 }
  0x7d   :  { %p636_p2 = pnand %p634_p1, %p631_p0 }
  0x7f   :  { %639 = shalt.err (!%p636_p2)
}
  0x80   :  { %s640_s4 = scalar_lea.vmem %s89_s23, 128  ;;  %p645_p4 = scmp.lt.s32.totalorder %s89_s23, %s89_s23 }
  0x81   :  { %p641_p3 = scmp.ne.s32.totalorder %s89_s23, %s640_s4  ;;  %p646_p5 = scmp.lt.s32.totalorder %s640_s4, %s640_s4 }
  0x83   :  { %p647_p6 = por %p646_p5, %p645_p4 }
  0x85   :  { %p648_p7 = pnand %p647_p6, %p641_p3 }
  0x87   :  { %651 = shalt.err (!%p648_p7)
}
  0x88   :  { %91 = dma.hbm_to_vmem [thread:$0]  %s909_s6, 128, %s89_s23, [#allocation12]  }
  0x89   :  { %s652_s14 = scalar_lea.hbm %s911_s8, 128 }
  0x8a   :  { %p653_p8 = scmp.ne.s32.totalorder %s911_s8, %s652_s14  ;;  %p656_p9 = scmp.lt.u32.totalorder %s652_s14, %s911_s8 }
  0x8c   :  { %p658_p10 = pnand %p656_p9, %p653_p8 }
  0x8e   :  { %661 = shalt.err (!%p658_p10)
}
  0x8f   :  { %s662_s20 = scalar_lea.vmem %s109_s25, 128  ;;  %p667_p12 = scmp.lt.s32.totalorder %s109_s25, %s109_s25 }
  0x90   :  { %p663_p11 = scmp.ne.s32.totalorder %s109_s25, %s662_s20  ;;  %p668_p13 = scmp.lt.s32.totalorder %s662_s20, %s662_s20 }
  0x92   :  { %p669_p0 = por %p668_p13, %p667_p12 }
  0x94   :  { %p670_p1 = pnand %p669_p0, %p663_p11 }
  0x96   :  { %673 = shalt.err (!%p670_p1)
}
  0x97   :  { %111 = dma.hbm_to_vmem [thread:$0]  %s911_s8, 128, %s109_s25, [#allocation15]  }
  0x98   :  { %696 = dma.done.wait [#allocation3], 256  }
  0x99   :  { %697 = vsyncadd [#allocation3], 4294967040 }
  0x9a   :  { %698 = dma.done.wait [#allocation6], 256  }
  0x9b   :  { %699 = vsyncadd [#allocation6], 4294967040 }
  0x9c   :  { %700 = dma.done.wait [#allocation9], 144  }
  0x9d   :  { %701 = vsyncadd [#allocation9], 4294967152 }
  0x9e   :  { %702 = dma.done.wait [#allocation12], 144  }
  0x9f   :  { %703 = vsyncadd [#allocation12], 4294967152 }
  0xa0   :  { %704 = dma.done.wait [#allocation15], 256  }
  0xa1   :  { %705 = vsyncadd [#allocation15], 4294967040  ;;  %v719_v0 = vmov 0.0|0.0   ;;  %vm720_vm0 = vmmov 0   ;;  %v721_v1 = vmov 0.0   ;;  %vm146_vm1 = vcmask 1043456  }
  0xa2   :  { %442 = vmatprep.subr.bf16.mxu0 %v719_v0  ;;  %446 = vmatprep.subr.bf16.mxu1 %v719_v0  ;;  %v140_v2 = vld [vmem:[#allocation2] sm:$0xff]  ;;  %v141_v3 = vld [vmem:[#allocation2 + $0x8] sm:$0xf]  ;;  %vm722_vm2 = vmmov 1   ;;  %v139_v5 = vld [vmem:[#allocation5] sm:$0xff]  ;;  %vm142_vm4 = vcmask 97280  }
  0xa3   :  { %430 = vmatprep.mubr.msk.f32.mxu0 %vm720_vm0, %v721_v1  ;;  %439 = vmatprep.mubr.msk.f32.mxu1 %vm720_vm0, %v721_v1  ;;  %vm444_vm3 = vmpackc.low %vm146_vm1, %vm722_vm2  ;;  %v443_v4 = vpack.c.bf16 %v141_v3, %v140_v2  ;;  %vm222_vm5 = vcmask 261120   ;;  %v723_v11 = vmov 0   ;;  %v220_v19 = vld [vmem:[#allocation7] sm:$0xff]  ;;  %v221_v22 = vld [vmem:[#allocation8] sm:$0xff]  ;;  %s724_s8 = smov 2   ;;  %s725_s22 = smov 1  }
  0xa4   :  { %470 = vset.pattern.permute.xlu1 %v723_v11  ;;  %471 = vset.pattern.permute.xlu0 %v723_v11  ;;  %v417_v25 = vld [vmem:[#allocation11] ss:$0 sm:$0xff]  ;;  %vm256_vm6 = vcmask 7168   ;;  %vm258_vm7 = vcmask 269312   ;;  %v416_v32 = vld [vmem:[#allocation10] ss:$0 sm:$0xff] }
  0xa5   :  { %445 = vmatpush3.bf16.msk.msra.mxu0 %vm444_vm3, %v443_v4  ;;  %s726_s3 = smov 126   ;;  %v282_v39 = vld [vmem:[#allocation13] sm:$0xff]  ;;  %vm283_vm8 = vcmask 195584   ;;  %v357_v53 = vld [vmem:[#allocation14] sm:$0xff]  ;;  %v358_v56 = vld [vmem:[#allocation16] sm:$0xff]  ;;  %s727_s7 = smov 127  }
  0xa6   :  { %s728_s2 = smov [#allocation17]   ;;  %vm393_vm9 = vcmask 252928  }
  0xa7   :  { %s401_s15 = sshll.u32 %s728_s2, 4  ;;  %s402_s15 = int_to_ptr.vmem [resolvable:$true] %s401_s15 }
  0xa8   :  { %431 = vmatmul.mubr.msk.f32.vlgmr.msra.gmra.mrb[0].mxu0 %vm142_vm4, %v139_v5  ;;  %s674_s12 = scalar_lea.vmem %s402_s15, 128  ;;  %p679_p3 = scmp.lt.s32.totalorder %s402_s15, %s402_s15 }
  0xa9   :  { %p675_p2 = scmp.ne.s32.totalorder %s402_s15, %s674_s12  ;;  %p680_p4 = scmp.lt.s32.totalorder %s674_s12, %s674_s12 }
  0xab   :  { %p681_p5 = por %p680_p4, %p679_p3 }
  0xad   :  { %p682_p6 = pnand %p681_p5, %p675_p2 }
 0x17b   :  { %v216_v6 = vpop.f32.mrb[0].mxu0 }
 0x17c   :  { %v432_v7 = vpop.f32.mrb[1].mxu0  ;;  %v223_v8 = vsel %vm222_vm5, %v216_v6, 0.0  ;;  %v226_v9 = vmul.f32 %v216_v6, %v216_v6 }
 0x17d   :  { %224 = vadd.xlane.f32.xlu0 %v223_v8 }
 0x17e   :  { %v227_v10 = vsel %vm222_vm5, %v226_v9, 0.0 }
 0x181   :  { %228 = vadd.xlane.f32.xlu0 %v227_v10 }
 0x20a   :  { %v225_v12 = vpop.xlane.xlu0 %224 }
 0x20b   :  { %v230_v13 = vmul.f32 0.03125, %v225_v12 }
 0x20d   :  { %v232_v15 = vmul.f32 %v230_v13, %v230_v13 }
 0x20e   :  { %v229_v14 = vpop.xlane.xlu0 %228 }
 0x20f   :  { %v231_v16 = vmul.f32 0.03125, %v229_v14 }
 0x211   :  { %v233_v17 = vsub.f32 %v231_v16, %v232_v15 }
 0x213   :  { %v234_v18 = vadd.f32 1e-05, %v233_v17 }
 0x215   :  { %472 = vrsqrt.f32 %v234_v18 }
 0x21f   :  { %v473_v20 = vpop.eup %472 }
 0x220   :  { %v236_v21 = vmul.f32 %v473_v20, %v220_v19 }
 0x222   :  { %241 = vperm.xlu1 %470, %v236_v21   ;;  %v237_v23 = vmul.f32 %v236_v21, %v230_v13 }
 0x224   :  { %v238_v24 = vsub.f32 %v221_v22, %v237_v23 }
 0x226   :  { %247 = vperm.xlu1 %470, %v238_v24  }
 0x22a   :  { %274 = vrot.lane.b32.xlu1 %v417_v25, %s724_s8 }
 0x2a1   :  { %v242_v26 = vpop.permute.xlu1 %241 }
 0x2a2   :  { %v244_v27 = vmul.f32 %v242_v26, %v216_v6 }
 0x2a5   :  { %v248_v28 = vpop.permute.xlu1 %247 }
 0x2a6   :  { %v250_v29 = vadd.f32 %v248_v28, %v244_v27 }
 0x2a8   :  { %v251_v30 = vmax.f32 %v250_v29, 0.0 }
 0x2a9   :  { %v275_v33 = vpop.permute.xlu1 %274 }
 0x2aa   :  { %253 = vrot.lane.b32.xlu0 %v251_v30, %s725_s22 }
 0x31c   :  { %v254_v31 = vpop.permute.xlu0 %253 }
 0x31d   :  { %v257_v34 = vsel %vm256_vm6, 0.0, %v254_v31 }
 0x31e   :  { %v259_v35 = vsel %vm258_vm7, %v257_v34, 0.0 }
 0x31f   :  { %v267_v36 = vmul.f32 %v416_v32, %v259_v35  ;;  %v277_v37 = vmul.f32 %v275_v33, %v259_v35 }
 0x321   :  { %279 = vrot.lane.b32.xlu1 %v277_v37, %s726_s3  ;;  %v447_v38 = vpack.c.bf16 %v251_v30, %v267_v36 }
 0x323   :  { %448 = vmatpush3.bf16.msra.mxu1 %v447_v38 }
 0x324   :  { %437 = vmatprep.subr.mxu1 %v721_v1 }
 0x393   :  { %v280_v40 = vpop.permute.xlu1 %279 }
 0x394   :  { %438 = vmatpush3.msra.mxu1 %v280_v40 }
 0x395   :  { %440 = vmatmul.mubr.msk.f32.vlgmr.msra.gmra.mrb[0].mxu1 %vm283_vm8, %v282_v39 }
 0x468   :  { %v353_v41 = vpop.f32.mrb[0].mxu1 }
 0x469   :  { %v441_v42 = vpop.f32.mrb[1].mxu1  ;;  %v359_v43 = vsel %vm222_vm5, %v353_v41, 0.0  ;;  %v362_v44 = vmul.f32 %v353_v41, %v353_v41 }
 0x46a   :  { %360 = vadd.xlane.f32.xlu1 %v359_v43 }
 0x46b   :  { %v363_v45 = vsel %vm222_vm5, %v362_v44, 0.0 }
 0x46c   :  { %364 = vadd.xlane.f32.xlu0 %v363_v45 }
 0x4f7   :  { %v361_v46 = vpop.xlane.xlu1 %360 }
 0x4f8   :  { %v366_v47 = vmul.f32 0.03125, %v361_v46 }
 0x4f9   :  { %v365_v48 = vpop.xlane.xlu0 %364 }
 0x4fa   :  { %v368_v49 = vmul.f32 %v366_v47, %v366_v47  ;;  %v367_v50 = vmul.f32 0.03125, %v365_v48 }
 0x4fc   :  { %v369_v51 = vsub.f32 %v367_v50, %v368_v49 }
 0x4fe   :  { %v370_v52 = vadd.f32 1e-05, %v369_v51 }
 0x500   :  { %474 = vrsqrt.f32 %v370_v52 }
 0x50a   :  { %v475_v54 = vpop.eup %474 }
 0x50b   :  { %v372_v55 = vmul.f32 %v475_v54, %v357_v53 }
 0x50d   :  { %377 = vperm.xlu1 %470, %v372_v55   ;;  %v373_v57 = vmul.f32 %v372_v55, %v366_v47 }
 0x50f   :  { %v374_v58 = vsub.f32 %v358_v56, %v373_v57 }
 0x511   :  { %383 = vperm.xlu0 %471, %v374_v58  }
 0x58c   :  { %v378_v59 = vpop.permute.xlu1 %377 }
 0x58d   :  { %v380_v60 = vmul.f32 %v378_v59, %v353_v41 }
 0x590   :  { %v384_v61 = vpop.permute.xlu0 %383 }
 0x591   :  { %v386_v62 = vadd.f32 %v384_v61, %v380_v60 }
 0x593   :  { %v387_v63 = vmax.f32 %v386_v62, 0.0 }
 0x595   :  { %389 = vrot.lane.b32.xlu1 %v387_v63, %s727_s7 }
 0x607   :  { %v390_v0 = vpop.permute.xlu1 %389 }
 0x608   :  { %v392_v1 = vmax.f32 %v387_v63, %v390_v0 }
 0x60a   :  { %394 = vst.msk [vmem:[#allocation17] sm:$0xff] %vm393_vm9, %v392_v1 }
 0x60b   :  { %685 = shalt.err (!%p682_p6)
}
 0x60c   :  { %s686_s25 = scalar_lea.hbm %s912_s9, 128 }
 0x60d   :  { %p687_p7 = scmp.ne.s32.totalorder %s912_s9, %s686_s25  ;;  %p690_p8 = scmp.lt.u32.totalorder %s686_s25, %s912_s9 }
 0x60f   :  { %p692_p9 = pnand %p690_p8, %p687_p7 }
 0x611   :  { %695 = shalt.err (!%p692_p9)
}
 0x612   :  { %404 = dma.vmem_to_hbm [thread:$0]  %s402_s15, 128, %s912_s9, [#allocation4]  }
 0x613   :  { %706 = dma.done.wait [#allocation4], 128  }
 0x614   :  { %707 = vsyncadd [#allocation4], 4294967168 }
 0x615   :  { %408 = vsyncpa [#allocation3], 1 }
 0x616   :  { %409 = vsyncpa [#allocation6], 1 }
 0x617   :  { %410 = vsyncpa [#allocation9], 1 }
 0x618   :  { %411 = vsyncpa [#allocation12], 1 }
 0x619   :  { %412 = vsyncpa [#allocation15], 1 }
 0x61a   :  { %413 = vsyncpa [#allocation4], 1 }

</bundles_post_ra>
